<compile_context>
chip_gen: v7x
topology: tpu7x:2x2x1
jax: 0.10.0
libtpu: 0.0.40
codegen_flags: <defaults>
</compile_context>

<pallas_src>
import math
from functools import partial

import jax
import jax.numpy as jnp
from jax.experimental import pallas as pl
from jax.experimental.pallas import tpu as pltpu

_VMEM_LIMIT_BYTES = 48 * 1024 * 1024  # fits under v7x's 64 MiB physical VMEM with headroom
_SQRT_2_OVER_PI = 0.7978845608028654


def _gelu_tanh(x):
    # TODO(synk): PyTorch nn.GELU() default is the exact erf formulation; tanh approximation
    # used here for guaranteed Mosaic lowering (max abs deviation ~1e-3).
    return 0.5 * x * (1.0 + jnp.tanh(_SQRT_2_OVER_PI * (x + 0.044715 * x * x * x)))


# --------------------------------------------------------------------------------------
# Kernels
# --------------------------------------------------------------------------------------
def _ln_matmul_kernel(x_ref, g_ref, b_ref, w_ref, wb_ref, o_ref, *, eps, apply_gelu):
    """o = [GELU]( LayerNorm(x) @ W + b ) for one row tile."""
    x = x_ref[...].astype(jnp.float32)                        # (tm, D)
    mu = jnp.mean(x, axis=-1, keepdims=True)
    xc = x - mu
    var = jnp.mean(xc * xc, axis=-1, keepdims=True)
    xn = xc * jax.lax.rsqrt(var + eps)
    xn = xn * g_ref[...] + b_ref[...]                         # LN affine (f32 params)
    acc = jnp.dot(xn.astype(w_ref.dtype), w_ref[...],
                  preferred_element_type=jnp.float32)         # MXU, f32 accumulation
    acc = acc + wb_ref[...]
    if apply_gelu:
        acc = _gelu_tanh(acc)
    o_ref[...] = acc.astype(o_ref.dtype)


def _matmul_bias_res_kernel(x_ref, w_ref, b_ref, r_ref, o_ref):
    """o = x @ W + b + residual for one row tile."""
    acc = jnp.dot(x_ref[...].astype(w_ref.dtype), w_ref[...],
                  preferred_element_type=jnp.float32)
    acc = acc + b_ref[...] + r_ref[...].astype(jnp.float32)
    o_ref[...] = acc.astype(o_ref.dtype)


def _attn_kernel(q_ref, k_ref, v_ref, o_ref, *, scale):
    """softmax(q k^T * scale) v for one (batch, head)."""
    q = q_ref[0]                                              # (N, Dh)
    k = k_ref[0]                                              # (N, Dh)
    s = jax.lax.dot_general(q, k, (((1,), (1,)), ((), ())),
                            preferred_element_type=jnp.float32)  # q @ k^T -> (N, N)
    s = s * scale
    m = jnp.max(s, axis=-1, keepdims=True)
    p = jnp.exp(s - m)
    p = p / jnp.sum(p, axis=-1, keepdims=True)
    o = jnp.dot(p.astype(v_ref.dtype), v_ref[0],
                preferred_element_type=jnp.float32)
    o_ref[0] = o.astype(o_ref.dtype)


# --------------------------------------------------------------------------------------
# pallas_call wrappers
# --------------------------------------------------------------------------------------
def _row_tile(m, tile_rows):
    tm = min(tile_rows, m)
    if m >= 8:
        tm = max(8, (tm // 8) * 8)  # keep sublane-aligned row tiles
    return tm


def _pad_rows(a, rows):
    if a.shape[0] == rows:
        return a
    return jnp.pad(a, ((0, rows - a.shape[0]),) + ((0, 0),) * (a.ndim - 1))


def _itemsize(a):
    return jnp.dtype(a.dtype).itemsize


def _ln_linear(x2d, gamma, beta, w, b, *, eps, apply_gelu, tile_rows):
    m, d = x2d.shape
    e = w.shape[1]
    tm = _row_tile(m, tile_rows)
    mp = pl.cdiv(m, tm) * tm
    xp = _pad_rows(x2d, mp)
    cost = pl.CostEstimate(
        flops=2 * mp * d * e,
        transcendentals=(mp * e if apply_gelu else mp),
        bytes_accessed=mp * d * _itemsize(xp) + d * e * _itemsize(w) + mp * e * _itemsize(xp),
    )
    out = pl.pallas_call(
        partial(_ln_matmul_kernel, eps=eps, apply_gelu=apply_gelu),
        out_shape=jax.ShapeDtypeStruct((mp, e), x2d.dtype),
        grid=(mp // tm,),
        in_specs=[
            pl.BlockSpec((tm, d), lambda i: (i, 0)),   # row tile of activations (pipelined)
            pl.BlockSpec((1, d), lambda i: (0, 0)),    # LN gamma (resident)
            pl.BlockSpec((1, d), lambda i: (0, 0)),    # LN beta  (resident)
            pl.BlockSpec((d, e), lambda i: (0, 0)),    # weight   (resident)
            pl.BlockSpec((1, e), lambda i: (0, 0)),    # bias f32 (resident)
        ],
        out_specs=pl.BlockSpec((tm, e), lambda i: (i, 0)),
        compiler_params=pltpu.CompilerParams(
            dimension_semantics=("parallel",),
            vmem_limit_bytes=_VMEM_LIMIT_BYTES,
        ),
        cost_estimate=cost,
    )(xp,
      gamma.reshape(1, d).astype(jnp.float32),
      beta.reshape(1, d).astype(jnp.float32),
      w,
      b.reshape(1, e).astype(jnp.float32))
    return out[:m] if mp != m else out


def _linear_bias_residual(x2d, w, b, res2d, *, tile_rows):
    m, k = x2d.shape
    e = w.shape[1]
    tm = _row_tile(m, tile_rows)
    mp = pl.cdiv(m, tm) * tm
    xp = _pad_rows(x2d, mp)
    rp = _pad_rows(res2d, mp)
    cost = pl.CostEstimate(
        flops=2 * mp * k * e,
        transcendentals=0,
        bytes_accessed=mp * k * _itemsize(xp) + k * e * _itemsize(w)
        + 2 * mp * e * _itemsize(rp),
    )
    out = pl.pallas_call(
        _matmul_bias_res_kernel,
        out_shape=jax.ShapeDtypeStruct((mp, e), res2d.dtype),
        grid=(mp // tm,),
        in_specs=[
            pl.BlockSpec((tm, k), lambda i: (i, 0)),   # row tile of activations
            pl.BlockSpec((k, e), lambda i: (0, 0)),    # weight (resident)
            pl.BlockSpec((1, e), lambda i: (0, 0)),    # bias f32 (resident)
            pl.BlockSpec((tm, e), lambda i: (i, 0)),   # residual row tile
        ],
        out_specs=pl.BlockSpec((tm, e), lambda i: (i, 0)),
        compiler_params=pltpu.CompilerParams(
            dimension_semantics=("parallel",),
            vmem_limit_bytes=_VMEM_LIMIT_BYTES,
        ),
        cost_estimate=cost,
    )(xp, w, b.reshape(1, e).astype(jnp.float32), rp)
    return out[:m] if mp != m else out


def _mha(q, k, v, *, scale):
    bb, hh, n, dh = q.shape
    bh = bb * hh
    qf = q.reshape(bh, n, dh)
    kf = k.reshape(bh, n, dh)
    vf = v.reshape(bh, n, dh)
    cost = pl.CostEstimate(
        flops=4 * bh * n * n * dh,
        transcendentals=bh * n * n,
        bytes_accessed=4 * bh * n * dh * _itemsize(qf),
    )
    out = pl.pallas_call(
        partial(_attn_kernel, scale=scale),
        out_shape=jax.ShapeDtypeStruct((bh, n, dh), q.dtype),
        grid=(bh,),
        in_specs=[pl.BlockSpec((1, n, dh), lambda i: (i, 0, 0)) for _ in range(3)],
        out_specs=pl.BlockSpec((1, n, dh), lambda i: (i, 0, 0)),
        compiler_params=pltpu.CompilerParams(
            dimension_semantics=("parallel",),
            vmem_limit_bytes=_VMEM_LIMIT_BYTES,
        ),
        cost_estimate=cost,
    )(qf, kf, vf)
    return out.reshape(bb, hh, n, dh)


# --------------------------------------------------------------------------------------
# SigLipBlock forward
# --------------------------------------------------------------------------------------
def siglip_block(x, params, *, num_heads, eps=1e-5, tile_rows=256):
    """
    x      : (B, N, D)
    params : dict with ln1_g/ln1_b (D,), wqkv (D,3D), bqkv (3D,), wproj (D,D), bproj (D,),
             ln2_g/ln2_b (D,), w1 (D,Hmlp), b1 (Hmlp,), w2 (Hmlp,D), b2 (D,)
             (linear weights are the transpose of PyTorch nn.Linear.weight; may be bf16)
    returns: (B, N, D)
    """
    bsz, n, d = x.shape
    assert d % num_heads == 0
    dh = d // num_heads
    m = bsz * n
    x2d = x.reshape(m, d)

    # ---- attention branch: x + proj(attn(LN1(x))) ----
    qkv = _ln_linear(x2d, params["ln1_g"], params["ln1_b"], params["wqkv"], params["bqkv"],
                     eps=eps, apply_gelu=False, tile_rows=tile_rows)            # (M, 3D)
    qkv = jnp.transpose(qkv.reshape(bsz, n, 3, num_heads, dh), (2, 0, 3, 1, 4))  # (3,B,H,N,Dh)
    q, k, v = qkv[0], qkv[1], qkv[2]
    attn = _mha(q, k, v, scale=dh ** -0.5)                                       # (B,H,N,Dh)
    attn2d = jnp.transpose(attn, (0, 2, 1, 3)).reshape(m, d)
    x1 = _linear_bias_residual(attn2d, params["wproj"], params["bproj"], x2d,
                               tile_rows=tile_rows)

    # ---- MLP branch: x + fc2(GELU(fc1(LN2(x)))) ----
    h = _ln_linear(x1, params["ln2_g"], params["ln2_b"], params["w1"], params["b1"],
                   eps=eps, apply_gelu=True, tile_rows=tile_rows)
    x2 = _linear_bias_residual(h, params["w2"], params["b2"], x1, tile_rows=tile_rows)
    return x2.reshape(bsz, n, d)


# --------------------------------------------------------------------------------------
# Pure-JAX reference (same math, same tanh-GELU) for the sanity check
# --------------------------------------------------------------------------------------
def _reference_block(x, p, *, num_heads, eps):
    def ln(t, g, b):
        mu = t.mean(-1, keepdims=True)
        var = ((t - mu) ** 2).mean(-1, keepdims=True)
        return (t - mu) / jnp.sqrt(var + eps) * g + b

    bsz, n, d = x.shape
    dh = d // num_heads
    h1 = ln(x, p["ln1_g"], p["ln1_b"])
    qkv = h1 @ p["wqkv"] + p["bqkv"]
    qkv = jnp.transpose(qkv.reshape(bsz, n, 3, num_heads, dh), (2, 0, 3, 1, 4))
    q, k, v = qkv[0], qkv[1], qkv[2]
    s = jnp.einsum("bhnd,bhmd->bhnm", q, k) * (dh ** -0.5)
    a = jax.nn.softmax(s, axis=-1)
    o = jnp.einsum("bhnm,bhmd->bhnd", a, v)
    o = jnp.transpose(o, (0, 2, 1, 3)).reshape(bsz, n, d)
    x = x + o @ p["wproj"] + p["bproj"]
    h2 = ln(x, p["ln2_g"], p["ln2_b"])
    mid = _gelu_tanh(h2 @ p["w1"] + p["b1"])
    return x + mid @ p["w2"] + p["b2"]


if __name__ == "__main__":
    # Small shapes consistent with the module: B=2, seq N=8, dim=32, 4 heads, mlp_ratio=4
    B, N, D = 2, 8, 32
    num_heads = 4
    mlp_hidden = int(D * 4.0)
    eps = 1e-5  # PyTorch nn.LayerNorm default

    key = jax.random.PRNGKey(0)
    ks = jax.random.split(key, 12)
    s = 0.05
    x = jax.random.normal(ks[0], (B, N, D), dtype=jnp.float32)
    params = dict(
        ln1_g=1.0 + 0.1 * jax.random.normal(ks[1], (D,), jnp.float32),
        ln1_b=0.1 * jax.random.normal(ks[2], (D,), jnp.float32),
        wqkv=s * jax.random.normal(ks[3], (D, 3 * D), jnp.float32),
        bqkv=jnp.zeros((3 * D,), jnp.float32),  # qkv_bias=False (module default)
        wproj=s * jax.random.normal(ks[4], (D, D), jnp.float32),
        bproj=s * jax.random.normal(ks[5], (D,), jnp.float32),
        ln2_g=1.0 + 0.1 * jax.random.normal(ks[6], (D,), jnp.float32),
        ln2_b=0.1 * jax.random.normal(ks[7], (D,), jnp.float32),
        w1=s * jax.random.normal(ks[8], (D, mlp_hidden), jnp.float32),
        b1=s * jax.random.normal(ks[9], (mlp_hidden,), jnp.float32),
        w2=s * jax.random.normal(ks[10], (mlp_hidden, D), jnp.float32),
        b2=s * jax.random.normal(ks[11], (D,), jnp.float32),
    )

    out = siglip_block(x, params, num_heads=num_heads, eps=eps)
    out = jax.block_until_ready(out)
    assert out.shape == (B, N, D)

    ref = _reference_block(x, params, num_heads=num_heads, eps=eps)
    assert bool(jnp.all(jnp.isfinite(out)))
    assert jnp.allclose(out, ref, atol=2e-2, rtol=2e-2), float(jnp.max(jnp.abs(out - ref)))

    print("KERNEL_OK")
</pallas_src>

<mosaic_0001>
module attributes {stable_mosaic.version = 11 : i64} {
  func.func @_ln_matmul_kernel(%arg0: i32, %arg1: memref<16x32xf32, #tpu.memory_space<vmem>>, %arg2: memref<1x32xf32, #tpu.memory_space<vmem>>, %arg3: memref<1x32xf32, #tpu.memory_space<vmem>>, %arg4: memref<32x96xf32, #tpu.memory_space<vmem>>, %arg5: memref<1x96xf32, #tpu.memory_space<vmem>>, %arg6: memref<16x96xf32, #tpu.memory_space<vmem>>) attributes {dimension_semantics = [#tpu.dimension_semantics<parallel>], iteration_bounds = array<i64: 1>, scalar_prefetch = 0 : i64, scratch_operands = 0 : i64, tpu.core_type = #tpu.core_type<tc>, window_params = [{transform_indices = @transform_0, window_bounds = array<i64: 16, 32>}, {pipeline_mode = #tpu.pipeline_mode<synchronous>, transform_indices = @transform_1, window_bounds = array<i64: 1, 32>}, {pipeline_mode = #tpu.pipeline_mode<synchronous>, transform_indices = @transform_2, window_bounds = array<i64: 1, 32>}, {pipeline_mode = #tpu.pipeline_mode<synchronous>, transform_indices = @transform_3, window_bounds = array<i64: 32, 96>}, {pipeline_mode = #tpu.pipeline_mode<synchronous>, transform_indices = @transform_4, window_bounds = array<i64: 1, 96>}, {transform_indices = @transform_5, window_bounds = array<i64: 16, 96>}]} {
    %c0 = arith.constant 0 : index
    %c0_0 = arith.constant 0 : index
    %0 = vector.load %arg1[%c0, %c0_0] : memref<16x32xf32, #tpu.memory_space<vmem>>, vector<16x32xf32>
    %cst = arith.constant dense<0.000000e+00> : vector<16xf32>
    %1 = vector.multi_reduction <add>, %0, %cst [1] : vector<16x32xf32> to vector<16xf32>
    %2 = vector.shape_cast %1 : vector<16xf32> to vector<16x1xf32>
    %cst_1 = arith.constant 3.200000e+01 : f32
    %3 = vector.broadcast %cst_1 : f32 to vector<16x1xf32>
    %4 = arith.divf %2, %3 : vector<16x1xf32>
    %5 = vector.broadcast %4 : vector<16x1xf32> to vector<16x32xf32>
    %6 = arith.subf %0, %5 : vector<16x32xf32>
    %7 = arith.mulf %6, %6 : vector<16x32xf32>
    %cst_2 = arith.constant dense<0.000000e+00> : vector<16xf32>
    %8 = vector.multi_reduction <add>, %7, %cst_2 [1] : vector<16x32xf32> to vector<16xf32>
    %9 = vector.shape_cast %8 : vector<16xf32> to vector<16x1xf32>
    %cst_3 = arith.constant 3.200000e+01 : f32
    %10 = vector.broadcast %cst_3 : f32 to vector<16x1xf32>
    %11 = arith.divf %9, %10 : vector<16x1xf32>
    %cst_4 = arith.constant 9.99999974E-6 : f32
    %12 = vector.broadcast %cst_4 : f32 to vector<16x1xf32>
    %13 = arith.addf %11, %12 : vector<16x1xf32>
    %14 = math.rsqrt %13 : vector<16x1xf32>
    %15 = vector.broadcast %14 : vector<16x1xf32> to vector<16x32xf32>
    %16 = arith.mulf %6, %15 : vector<16x32xf32>
    %c0_5 = arith.constant 0 : index
    %c0_6 = arith.constant 0 : index
    %17 = vector.load %arg2[%c0_5, %c0_6] : memref<1x32xf32, #tpu.memory_space<vmem>>, vector<1x32xf32>
    %18 = vector.broadcast %17 : vector<1x32xf32> to vector<16x32xf32>
    %19 = arith.mulf %16, %18 : vector<16x32xf32>
    %c0_7 = arith.constant 0 : index
    %c0_8 = arith.constant 0 : index
    %20 = vector.load %arg3[%c0_7, %c0_8] : memref<1x32xf32, #tpu.memory_space<vmem>>, vector<1x32xf32>
    %21 = vector.broadcast %20 : vector<1x32xf32> to vector<16x32xf32>
    %22 = arith.addf %19, %21 : vector<16x32xf32>
    %c0_9 = arith.constant 0 : index
    %c0_10 = arith.constant 0 : index
    %23 = vector.load %arg4[%c0_9, %c0_10] : memref<32x96xf32, #tpu.memory_space<vmem>>, vector<32x96xf32>
    %cst_11 = arith.constant dense<0.000000e+00> : vector<16x96xf32>
    %24 = tpu.matmul %22, %23, %cst_11 {dimension_numbers = #tpu.dot_dimension_numbers<[1], [0], [0], [1], [0, 0, 1, 1], [], []>} : vector<16x32xf32>, vector<32x96xf32>, vector<16x96xf32> -> vector<16x96xf32>
    %c0_12 = arith.constant 0 : index
    %c0_13 = arith.constant 0 : index
    %25 = vector.load %arg5[%c0_12, %c0_13] : memref<1x96xf32, #tpu.memory_space<vmem>>, vector<1x96xf32>
    %26 = vector.broadcast %25 : vector<1x96xf32> to vector<16x96xf32>
    %27 = arith.addf %24, %26 : vector<16x96xf32>
    %c0_14 = arith.constant 0 : index
    %c0_15 = arith.constant 0 : index
    %28 = vector.load %arg6[%c0_14, %c0_15] : memref<16x96xf32, #tpu.memory_space<vmem>>, vector<16x96xf32>
    tpu.vector_store %arg6[%c0_14, %c0_15], %27 {strides = array<i32>} : memref<16x96xf32, #tpu.memory_space<vmem>>, vector<16x96xf32>,
    return
  }
  func.func @transform_0(%arg0: i32) -> (i32, i32) {
    %c0_i32 = arith.constant 0 : i32
    %c0_i32_0 = arith.constant 0 : i32
    return %arg0, %c0_i32 : i32, i32
  }
  func.func @transform_1(%arg0: i32) -> (i32, i32) {
    %c0_i32 = arith.constant 0 : i32
    %c0_i32_0 = arith.constant 0 : i32
    %c0_i32_1 = arith.constant 0 : i32
    return %c0_i32, %c0_i32_0 : i32, i32
  }
  func.func @transform_2(%arg0: i32) -> (i32, i32) {
    %c0_i32 = arith.constant 0 : i32
    %c0_i32_0 = arith.constant 0 : i32
    %c0_i32_1 = arith.constant 0 : i32
    return %c0_i32, %c0_i32_0 : i32, i32
  }
  func.func @transform_3(%arg0: i32) -> (i32, i32) {
    %c0_i32 = arith.constant 0 : i32
    %c0_i32_0 = arith.constant 0 : i32
    %c0_i32_1 = arith.constant 0 : i32
    return %c0_i32, %c0_i32_0 : i32, i32
  }
  func.func @transform_4(%arg0: i32) -> (i32, i32) {
    %c0_i32 = arith.constant 0 : i32
    %c0_i32_0 = arith.constant 0 : i32
    %c0_i32_1 = arith.constant 0 : i32
    return %c0_i32, %c0_i32_0 : i32, i32
  }
  func.func @transform_5(%arg0: i32) -> (i32, i32) {
    %c0_i32 = arith.constant 0 : i32
    %c0_i32_0 = arith.constant 0 : i32
    return %arg0, %c0_i32 : i32, i32
  }
}

</mosaic_0001>

<bundles_post_ra>
// kernel: tpu_custom_call.1
= control target key start
LH: loop header
LB: loop body
LE: loop exit
PB: predicated region body
PF: predicated region fallthrough
CT: control target
= control target key end

     0   :  { %10 = vsyncpa [#allocation3], 0  ;;  %s416_s0 = inlined_call_operand.hbm [shape: f32[16,32], index: 0, kind: input, shape index: {}]   ;;  %s417_s1 = inlined_call_operand.vmem [shape: f32[1,32], index: 1, kind: input, shape index: {}]   ;;  %s418_s2 = inlined_call_operand.vmem [shape: f32[1,32], index: 2, kind: input, shape index: {}]   ;;  %s419_s3 = inlined_call_operand.hbm [shape: f32[32,96], index: 3, kind: input, shape index: {}]   ;;  %s420_s4 = inlined_call_operand.vmem [shape: f32[1,96], index: 4, kind: input, shape index: {}]   ;;  %s421_s5 = inlined_call_operand.hbm [shape: f32[16,96], index: 5, kind: output, shape index: {}]  }
   0x1   :  { %11 = vsyncpa [#allocation6], 0 }
   0x2   :  { %12 = vsyncpa [#allocation4], 0  ;;  %s321_s18 = smov [#allocation2]   ;;  %s249_s22 = scalar_lea.hbm %s416_s0, 256 }
   0x3   :  { %s18_s19 = sshll.u32 %s321_s18, 4  ;;  %p250_p0 = scmp.ne.s32.totalorder %s416_s0, %s249_s22  ;;  %s19_s19 = int_to_ptr.vmem [resolvable:$true] %s18_s19 }
   0x4   :  { %p253_p1 = scmp.lt.u32.totalorder %s249_s22, %s416_s0 }
   0x6   :  { %p255_p2 = pnand %p253_p1, %p250_p0 }
   0x8   :  { %258 = shalt.err (!%p255_p2)
}
   0x9   :  { %s259_s27 = scalar_lea.vmem %s19_s19, 256  ;;  %p264_p4 = scmp.lt.s32.totalorder %s19_s19, %s19_s19 }
   0xa   :  { %p260_p3 = scmp.ne.s32.totalorder %s19_s19, %s259_s27  ;;  %p265_p5 = scmp.lt.s32.totalorder %s259_s27, %s259_s27 }
   0xc   :  { %p266_p6 = por %p265_p5, %p264_p4 }
   0xe   :  { %p267_p7 = pnand %p266_p6, %p260_p3 }
  0x10   :  { %270 = shalt.err (!%p267_p7)
}
  0x11   :  { %s322_s28 = smov 128   ;;  %s323_s29 = smov 8  }
  0x12   :  { %24 = dma.hbm_to_vmem [thread:$0]  %s416_s0, 256, %s19_s19, [#allocation3], %s322_s28, %s322_s28, %s323_s29  }
  0x13   :  { %s324_s7 = smov [#allocation5]   ;;  %s271_s11 = scalar_lea.hbm %s419_s3, 512 }
  0x14   :  { %s34_s8 = sshll.u32 %s324_s7, 4  ;;  %p272_p8 = scmp.ne.s32.totalorder %s419_s3, %s271_s11  ;;  %s35_s8 = int_to_ptr.vmem [resolvable:$true] %s34_s8 }
  0x15   :  { %p275_p9 = scmp.lt.u32.totalorder %s271_s11, %s419_s3 }
  0x17   :  { %p277_p10 = pnand %p275_p9, %p272_p8 }
  0x19   :  { %280 = shalt.err (!%p277_p10)
}
  0x1a   :  { %s281_s16 = scalar_lea.vmem %s35_s8, 512  ;;  %p286_p12 = scmp.lt.s32.totalorder %s35_s8, %s35_s8 }
  0x1b   :  { %p282_p11 = scmp.ne.s32.totalorder %s35_s8, %s281_s16  ;;  %p287_p13 = scmp.lt.s32.totalorder %s281_s16, %s281_s16 }
  0x1d   :  { %p288_p0 = por %p287_p13, %p286_p12 }
  0x1f   :  { %p289_p1 = pnand %p288_p0, %p282_p11 }
  0x21   :  { %292 = shalt.err (!%p289_p1)
}
  0x22   :  { %40 = dma.hbm_to_vmem [thread:$0]  %s419_s3, 512, %s35_s8, [#allocation6], %s322_s28, %s322_s28, %s323_s29  }
  0x23   :  { %315 = dma.done.wait [#allocation3], 256  }
  0x24   :  { %316 = vsyncadd [#allocation3], 4294967040 }
  0x25   :  { %317 = dma.done.wait [#allocation6], 512  }
  0x26   :  { %318 = vsyncadd [#allocation6], 4294966784  ;;  %vm51_vm0 = vcmask 261120   ;;  %v49_v0 = vld [vmem:[#allocation2] sm:$0xff]  ;;  %v50_v1 = vld [vmem:[#allocation2 + $0x8] sm:$0xff]  ;;  %vm189_vm1 = vcmask 785408  }
  0x27   :  { %v52_v2 = vsel %vm51_vm0, %v49_v0, 0.0  ;;  %v55_v3 = vsel %vm51_vm0, %v50_v1, 0.0  ;;  %v97_v14 = vld [vmem:[#allocation5] sm:$0xff]  ;;  %v98_v15 = vld [vmem:[#allocation5 + $0x8] sm:$0xff]  ;;  %v99_v16 = vld [vmem:[#allocation5 + $0x10] sm:$0xff] }
  0x28   :  { %53 = vadd.xlane.f32.xlu0 %v52_v2  ;;  %v232_v17 = vpack.c.bf16 %v98_v15, %v97_v14  ;;  %v100_v18 = vld [vmem:[#allocation5 + $0x18] sm:$0xff]  ;;  %v210_v27 = vld [vmem:[%s417_s1] ss:$0 sm:$0xff]  ;;  %s325_s1 = smov [#allocation7]  }
  0x29   :  { %v236_v19 = vpack.c.bf16 %v100_v18, %v99_v16  ;;  %v211_v29 = vld [vmem:[%s418_s2] ss:$0 sm:$0xff]  ;;  %s197_s23 = sshll.u32 %s325_s1, 4  ;;  %s198_s23 = int_to_ptr.vmem [resolvable:$true] %s197_s23 }
  0x2a   :  { %233 = vmatprep.subr.bf16.mxu0 %v232_v17  ;;  %v212_v36 = vld [vmem:[%s420_s4] ss:$0 sm:$0xff]  ;;  %s293_s2 = scalar_lea.vmem %s198_s23, 256  ;;  %p298_p3 = scmp.lt.s32.totalorder %s198_s23, %s198_s23 }
  0x2b   :  { %235 = vmatpush3.bf16.msra.mxu0 %v232_v17  ;;  %p294_p2 = scmp.ne.s32.totalorder %s198_s23, %s293_s2  ;;  %p299_p4 = scmp.lt.s32.totalorder %s293_s2, %s293_s2 }
  0x2c   :  { %56 = vadd.xlane.f32.xlu0 %v55_v3  ;;  %237 = vmatprep.subr.bf16.mxu0 %v236_v19 }
  0x2d   :  { %p300_p5 = por %p299_p4, %p298_p3 }
  0x2f   :  { %239 = vmatpush3.bf16.msra.mxu0 %v236_v19  ;;  %p301_p6 = pnand %p300_p5, %p294_p2 }
  0xb5   :  { %v54_v4 = vpop.xlane.xlu0 %53 }
  0xb6   :  { %v59_v5 = vmul.f32 0.03125, %v54_v4 }
  0xb8   :  { %v61_v6 = vsub.f32 %v49_v0, %v59_v5 }
  0xb9   :  { %v57_v7 = vpop.xlane.xlu0 %56 }
  0xba   :  { %v60_v8 = vmul.f32 0.03125, %v57_v7  ;;  %v63_v9 = vmul.f32 %v61_v6, %v61_v6 }
  0xbc   :  { %v62_v10 = vsub.f32 %v50_v1, %v60_v8  ;;  %v65_v11 = vsel %vm51_vm0, %v63_v9, 0.0 }
  0xbd   :  { %66 = vadd.xlane.f32.xlu1 %v65_v11 }
  0xbe   :  { %v64_v12 = vmul.f32 %v62_v10, %v62_v10 }
  0xc0   :  { %v68_v13 = vsel %vm51_vm0, %v64_v12, 0.0 }
  0xc1   :  { %69 = vadd.xlane.f32.xlu1 %v68_v13 }
 0x14a   :  { %v67_v20 = vpop.xlane.xlu1 %66 }
 0x14b   :  { %v71_v21 = vmul.f32 0.03125, %v67_v20 }
 0x14d   :  { %v73_v22 = vadd.f32 1e-05, %v71_v21 }
 0x14e   :  { %v70_v23 = vpop.xlane.xlu1 %69 }
 0x14f   :  { %245 = vrsqrt.f32 %v73_v22  ;;  %v72_v24 = vmul.f32 0.03125, %v70_v23 }
 0x151   :  { %v74_v25 = vadd.f32 1e-05, %v72_v24 }
 0x153   :  { %247 = vrsqrt.f32 %v74_v25 }
 0x159   :  { %v246_v26 = vpop.eup %245 }
 0x15a   :  { %v77_v28 = vmul.f32 %v246_v26, %v61_v6 }
 0x15c   :  { %v86_v30 = vmul.f32 %v210_v27, %v77_v28 }
 0x15d   :  { %v248_v31 = vpop.eup %247 }
 0x15e   :  { %v78_v32 = vmul.f32 %v248_v31, %v62_v10  ;;  %v95_v33 = vadd.f32 %v211_v29, %v86_v30 }
 0x160   :  { %v87_v34 = vmul.f32 %v210_v27, %v78_v32  ;;  %229 = vmatprep.mubr.msk.f32.mxu0 %vm51_vm0, %v95_v33 }
 0x162   :  { %v96_v35 = vadd.f32 %v211_v29, %v87_v34 }
 0x164   :  { %230 = vmatmul.mubr.msk.f32.vlgmr.msra.gmra.mrb[0].mxu0 %vm51_vm0, %v96_v35 }
 0x237   :  { %v231_v37 = vpop.f32.mrb[0].mxu0 }
 0x238   :  { %v186_v38 = vadd.f32 %v231_v37, %v212_v36  ;;  %v180_v39 = vpop.f32.mrb[1].mxu0 }
 0x239   :  { %v181_v40 = vadd.f32 %v212_v36, %v180_v39 }
 0x23a   :  { %191 = vst.msk [vmem:[#allocation7 + $0x8] sm:$0xff] %vm189_vm1, %v186_v38 }
 0x23b   :  { %190 = vst.msk [vmem:[#allocation7] sm:$0xff] %vm189_vm1, %v181_v40 }
 0x23c   :  { %304 = shalt.err (!%p301_p6)
}
 0x23d   :  { %s305_s4 = scalar_lea.hbm %s421_s5, 256 }
 0x23e   :  { %p306_p7 = scmp.ne.s32.totalorder %s421_s5, %s305_s4  ;;  %p309_p8 = scmp.lt.u32.totalorder %s305_s4, %s421_s5 }
 0x240   :  { %p311_p9 = pnand %p309_p8, %p306_p7 }
 0x242   :  { %314 = shalt.err (!%p311_p9)
}
 0x243   :  { %203 = dma.vmem_to_hbm [thread:$0]  %s198_s23, 256, %s421_s5, [#allocation4], %s322_s28, %s322_s28, %s323_s29  }
 0x244   :  { %319 = dma.done.wait [#allocation4], 256  }
 0x245   :  { %320 = vsyncadd [#allocation4], 4294967040 }
 0x246   :  { %207 = vsyncpa [#allocation3], 1 }
 0x247   :  { %208 = vsyncpa [#allocation6], 1 }
 0x248   :  { %209 = vsyncpa [#allocation4], 1 }

</bundles_post_ra>
